<compile_context>
chip_gen: v7x
topology: tpu7x:2x2x1
jax: 0.10.0
libtpu: 0.0.40
codegen_flags: <defaults>
</compile_context>

<pallas_src>
import jax
import jax.numpy as jnp
from jax.experimental import pallas as pl
from jax.experimental.pallas import tpu as pltpu

LANE = 128
SUBLANE = 8


def actor_net_kernel(s_ref, w1_ref, b1_ref, w2_ref, b2_ref, w3_ref, b3_ref, o_ref):
    # Layer 1: Linear + ReLU (MXU accumulates in f32; elementwise stays f32).
    h1 = jnp.dot(s_ref[...], w1_ref[...], preferred_element_type=jnp.float32)
    h1 = jnp.maximum(h1 + b1_ref[...], 0.0)
    # Layer 2: Linear + ReLU.
    h2 = jnp.dot(h1.astype(w2_ref.dtype), w2_ref[...],
                 preferred_element_type=jnp.float32)
    h2 = jnp.maximum(h2 + b2_ref[...], 0.0)
    # Layer 3: Linear + Tanh (output columns are lane-dense / zero-padded).
    h3 = jnp.dot(h2.astype(w3_ref.dtype), w3_ref[...],
                 preferred_element_type=jnp.float32)
    o_ref[...] = jnp.tanh(h3 + b3_ref[...]).astype(o_ref.dtype)


def actor_net_forward(s, w1, b1, w2, b2, w3, b3, *,
                      block_batch=512, compute_dtype=jnp.float32):
    """Fused 3-layer MLP forward, gridded over the batch axis.

    block_batch: batch tile size (pipeline granularity). Rounded down to a
      multiple of 8 sublanes; the batch is zero-padded up to a multiple of the
      tile so arbitrary batch sizes keep a pipelined multi-step grid.
    compute_dtype: dtype fed to the MXU for s and the weights (use
      jnp.bfloat16 on v6e/v7x to halve HBM traffic). Accumulation and all
      elementwise math remain float32; output is float32.
    """
    batch, state_dim = s.shape
    hidden = w1.shape[1]
    action_dim = w3.shape[1]

    # --- Lane-dense output: pad final-layer columns to a multiple of 128. ---
    padded_act = max(LANE, pl.cdiv(action_dim, LANE) * LANE)
    if padded_act != action_dim:
        w3p = jnp.zeros((w3.shape[0], padded_act), w3.dtype).at[:, :action_dim].set(w3)
        b3p = jnp.zeros((1, padded_act), b3.dtype).at[:, :action_dim].set(b3)
    else:
        w3p, b3p = w3, b3

    # --- Batch tile: multiple of 8 sublanes; pad batch to a tile multiple. ---
    bt = min(block_batch, batch)
    bt = max(SUBLANE, (bt // SUBLANE) * SUBLANE)
    padded_batch = pl.cdiv(batch, bt) * bt
    if padded_batch != batch:
        s_in = jnp.zeros((padded_batch, state_dim), s.dtype).at[:batch, :].set(s)
    else:
        s_in = s
    grid = (padded_batch // bt,)

    # --- Cast the streamed input and weights; biases stay f32. ---
    s_c = s_in.astype(compute_dtype)
    w1c = w1.astype(compute_dtype)
    w2c = w2.astype(compute_dtype)
    w3c = w3p.astype(compute_dtype)

    # Parameters: full-array blocks with a constant index_map -> the pipeline
    # sees an unchanged block index every step and keeps them VMEM-resident
    # (DMA'd once) instead of re-fetching per tile.
    def full(a):
        nd = a.ndim
        return pl.BlockSpec(a.shape, lambda i, _nd=nd: (0,) * _nd)

    itemsize = jnp.dtype(compute_dtype).itemsize
    cost = pl.CostEstimate(
        flops=2 * padded_batch * (state_dim * hidden + hidden * hidden
                                  + hidden * padded_act),
        transcendentals=padded_batch * padded_act,  # tanh
        bytes_accessed=int(
            padded_batch * state_dim * itemsize       # streamed input
            + padded_batch * padded_act * 4           # streamed output (f32)
            + (state_dim * hidden + hidden * hidden + hidden * padded_act) * itemsize
            + (hidden + hidden + padded_act) * 4      # biases (f32)
        ),
    )

    out_padded = pl.pallas_call(
        actor_net_kernel,
        out_shape=jax.ShapeDtypeStruct((padded_batch, padded_act), jnp.float32),
        grid=grid,
        in_specs=[
            pl.BlockSpec((bt, state_dim), lambda i: (i, 0)),  # streamed activations
            full(w1c), full(b1), full(w2c), full(b2), full(w3c), full(b3p),
        ],
        out_specs=pl.BlockSpec((bt, padded_act), lambda i: (i, 0)),
        compiler_params=pltpu.CompilerParams(
            dimension_semantics=("parallel",)),  # 2nd TC on v7x; no-op on v5e/v6e
        cost_estimate=cost,
    )(s_c, w1c, b1, w2c, b2, w3c, b3p)

    # Slice off padded batch rows and zero-padded action columns.
    return out_padded[:batch, :action_dim]


def init_linear_params(key, fan_in, fan_out):
    """PyTorch-style Linear init: U(-1/sqrt(fan_in), 1/sqrt(fan_in)).
    Weight is returned transposed as (fan_in, fan_out); bias as (1, fan_out)."""
    kw, kb = jax.random.split(key)
    bound = 1.0 / jnp.sqrt(fan_in)
    w = jax.random.uniform(kw, (fan_in, fan_out), jnp.float32, -bound, bound)
    b = jax.random.uniform(kb, (1, fan_out), jnp.float32, -bound, bound)
    return w, b


def reference_forward(s, w1, b1, w2, b2, w3, b3):
    h1 = jnp.maximum(s @ w1 + b1, 0.0)
    h2 = jnp.maximum(h1 @ w2 + b2, 0.0)
    return jnp.tanh(h2 @ w3 + b3)


if __name__ == "__main__":
    # Shapes consistent with the module: hidden_dim=128 (from the spec),
    # small state/action dims typical for DDPG, modest batch to exercise the
    # batch grid (64 rows / 32-row tiles -> grid=(2,)).
    batch, state_dim, hidden_dim, action_dim = 64, 8, 128, 4

    key = jax.random.PRNGKey(0)
    k_s, k1, k2, k3 = jax.random.split(key, 4)

    s = jax.random.normal(k_s, (batch, state_dim), jnp.float32)
    w1, b1 = init_linear_params(k1, state_dim, hidden_dim)
    w2, b2 = init_linear_params(k2, hidden_dim, hidden_dim)
    w3, b3 = init_linear_params(k3, hidden_dim, action_dim)

    ref = reference_forward(s, w1, b1, w2, b2, w3, b3)

    # Default f32 path — tight tolerance vs. pure-JAX reference.
    out = jax.block_until_ready(
        actor_net_forward(s, w1, b1, w2, b2, w3, b3, block_batch=32))
    assert out.shape == (batch, action_dim)
    assert jnp.allclose(out, ref, atol=1e-5, rtol=1e-5)

    # bf16 streaming path (the v6e/v7x HBM-traffic saver) — looser tolerance.
    out_bf16 = jax.block_until_ready(
        actor_net_forward(s, w1, b1, w2, b2, w3, b3, block_batch=32,
                          compute_dtype=jnp.bfloat16))
    assert out_bf16.shape == (batch, action_dim)
    assert jnp.allclose(out_bf16, ref, atol=5e-2, rtol=5e-2)

    # Ragged batch path (batch not a multiple of the tile) — exercises the
    # zero-pad + slice logic while keeping a pipelined grid.
    s_ragged = s[:50]
    ref_ragged = reference_forward(s_ragged, w1, b1, w2, b2, w3, b3)
    out_ragged = jax.block_until_ready(
        actor_net_forward(s_ragged, w1, b1, w2, b2, w3, b3, block_batch=32))
    assert out_ragged.shape == (50, action_dim)
    assert jnp.allclose(out_ragged, ref_ragged, atol=1e-5, rtol=1e-5)

    print("KERNEL_OK")
</pallas_src>

<mosaic_0001>
module attributes {stable_mosaic.version = 11 : i64} {
  func.func @actor_net_kernel(%arg0: i32, %arg1: memref<32x8xf32, #tpu.memory_space<vmem>>, %arg2: memref<8x128xf32, #tpu.memory_space<vmem>>, %arg3: memref<1x128xf32, #tpu.memory_space<vmem>>, %arg4: memref<128x128xf32, #tpu.memory_space<vmem>>, %arg5: memref<1x128xf32, #tpu.memory_space<vmem>>, %arg6: memref<128x128xf32, #tpu.memory_space<vmem>>, %arg7: memref<1x128xf32, #tpu.memory_space<vmem>>, %arg8: memref<32x128xf32, #tpu.memory_space<vmem>>) attributes {dimension_semantics = [#tpu.dimension_semantics<parallel>], iteration_bounds = array<i64: 2>, scalar_prefetch = 0 : i64, scratch_operands = 0 : i64, tpu.core_type = #tpu.core_type<tc>, window_params = [{transform_indices = @transform_0, window_bounds = array<i64: 32, 8>}, {pipeline_mode = #tpu.pipeline_mode<synchronous>, transform_indices = @transform_1, window_bounds = array<i64: 8, 128>}, {pipeline_mode = #tpu.pipeline_mode<synchronous>, transform_indices = @transform_2, window_bounds = array<i64: 1, 128>}, {pipeline_mode = #tpu.pipeline_mode<synchronous>, transform_indices = @transform_3, window_bounds = array<i64: 128, 128>}, {pipeline_mode = #tpu.pipeline_mode<synchronous>, transform_indices = @transform_4, window_bounds = array<i64: 1, 128>}, {pipeline_mode = #tpu.pipeline_mode<synchronous>, transform_indices = @transform_5, window_bounds = array<i64: 128, 128>}, {pipeline_mode = #tpu.pipeline_mode<synchronous>, transform_indices = @transform_6, window_bounds = array<i64: 1, 128>}, {transform_indices = @transform_7, window_bounds = array<i64: 32, 128>}]} {
    %c0 = arith.constant 0 : index
    %c0_0 = arith.constant 0 : index
    %0 = vector.load %arg1[%c0, %c0_0] : memref<32x8xf32, #tpu.memory_space<vmem>>, vector<32x8xf32>
    %c0_1 = arith.constant 0 : index
    %c0_2 = arith.constant 0 : index
    %1 = vector.load %arg2[%c0_1, %c0_2] : memref<8x128xf32, #tpu.memory_space<vmem>>, vector<8x128xf32>
    %cst = arith.constant dense<0.000000e+00> : vector<32x128xf32>
    %2 = tpu.matmul %0, %1, %cst {dimension_numbers = #tpu.dot_dimension_numbers<[1], [0], [0], [1], [0, 0, 1, 1], [], []>} : vector<32x8xf32>, vector<8x128xf32>, vector<32x128xf32> -> vector<32x128xf32>
    %c0_3 = arith.constant 0 : index
    %c0_4 = arith.constant 0 : index
    %3 = vector.load %arg3[%c0_3, %c0_4] : memref<1x128xf32, #tpu.memory_space<vmem>>, vector<1x128xf32>
    %4 = vector.broadcast %3 : vector<1x128xf32> to vector<32x128xf32>
    %5 = arith.addf %2, %4 : vector<32x128xf32>
    %cst_5 = arith.constant 0.000000e+00 : f32
    %6 = vector.broadcast %cst_5 : f32 to vector<32x128xf32>
    %7 = arith.maximumf %5, %6 : vector<32x128xf32>
    %c0_6 = arith.constant 0 : index
    %c0_7 = arith.constant 0 : index
    %8 = vector.load %arg4[%c0_6, %c0_7] : memref<128x128xf32, #tpu.memory_space<vmem>>, vector<128x128xf32>
    %cst_8 = arith.constant dense<0.000000e+00> : vector<32x128xf32>
    %9 = tpu.matmul %7, %8, %cst_8 {dimension_numbers = #tpu.dot_dimension_numbers<[1], [0], [0], [1], [0, 0, 1, 1], [], []>} : vector<32x128xf32>, vector<128x128xf32>, vector<32x128xf32> -> vector<32x128xf32>
    %c0_9 = arith.constant 0 : index
    %c0_10 = arith.constant 0 : index
    %10 = vector.load %arg5[%c0_9, %c0_10] : memref<1x128xf32, #tpu.memory_space<vmem>>, vector<1x128xf32>
    %11 = vector.broadcast %10 : vector<1x128xf32> to vector<32x128xf32>
    %12 = arith.addf %9, %11 : vector<32x128xf32>
    %cst_11 = arith.constant 0.000000e+00 : f32
    %13 = vector.broadcast %cst_11 : f32 to vector<32x128xf32>
    %14 = arith.maximumf %12, %13 : vector<32x128xf32>
    %c0_12 = arith.constant 0 : index
    %c0_13 = arith.constant 0 : index
    %15 = vector.load %arg6[%c0_12, %c0_13] : memref<128x128xf32, #tpu.memory_space<vmem>>, vector<128x128xf32>
    %cst_14 = arith.constant dense<0.000000e+00> : vector<32x128xf32>
    %16 = tpu.matmul %14, %15, %cst_14 {dimension_numbers = #tpu.dot_dimension_numbers<[1], [0], [0], [1], [0, 0, 1, 1], [], []>} : vector<32x128xf32>, vector<128x128xf32>, vector<32x128xf32> -> vector<32x128xf32>
    %c0_15 = arith.constant 0 : index
    %c0_16 = arith.constant 0 : index
    %17 = vector.load %arg7[%c0_15, %c0_16] : memref<1x128xf32, #tpu.memory_space<vmem>>, vector<1x128xf32>
    %18 = vector.broadcast %17 : vector<1x128xf32> to vector<32x128xf32>
    %19 = arith.addf %16, %18 : vector<32x128xf32>
    %20 = math.tanh %19 : vector<32x128xf32>
    %c0_17 = arith.constant 0 : index
    %c0_18 = arith.constant 0 : index
    %21 = vector.load %arg8[%c0_17, %c0_18] : memref<32x128xf32, #tpu.memory_space<vmem>>, vector<32x128xf32>
    tpu.vector_store %arg8[%c0_17, %c0_18], %20 {strides = array<i32>} : memref<32x128xf32, #tpu.memory_space<vmem>>, vector<32x128xf32>,
    return
  }
  func.func @transform_0(%arg0: i32) -> (i32, i32) {
    %c0_i32 = arith.constant 0 : i32
    %c0_i32_0 = arith.constant 0 : i32
    return %arg0, %c0_i32 : i32, i32
  }
  func.func @transform_1(%arg0: i32) -> (i32, i32) {
    %c0_i32 = arith.constant 0 : i32
    %c0_i32_0 = arith.constant 0 : i32
    %c0_i32_1 = arith.constant 0 : i32
    return %c0_i32, %c0_i32_0 : i32, i32
  }
  func.func @transform_2(%arg0: i32) -> (i32, i32) {
    %c0_i32 = arith.constant 0 : i32
    %c0_i32_0 = arith.constant 0 : i32
    %c0_i32_1 = arith.constant 0 : i32
    return %c0_i32, %c0_i32_0 : i32, i32
  }
  func.func @transform_3(%arg0: i32) -> (i32, i32) {
    %c0_i32 = arith.constant 0 : i32
    %c0_i32_0 = arith.constant 0 : i32
    %c0_i32_1 = arith.constant 0 : i32
    return %c0_i32, %c0_i32_0 : i32, i32
  }
  func.func @transform_4(%arg0: i32) -> (i32, i32) {
    %c0_i32 = arith.constant 0 : i32
    %c0_i32_0 = arith.constant 0 : i32
    %c0_i32_1 = arith.constant 0 : i32
    return %c0_i32, %c0_i32_0 : i32, i32
  }
  func.func @transform_5(%arg0: i32) -> (i32, i32) {
    %c0_i32 = arith.constant 0 : i32
    %c0_i32_0 = arith.constant 0 : i32
    %c0_i32_1 = arith.constant 0 : i32
    return %c0_i32, %c0_i32_0 : i32, i32
  }
  func.func @transform_6(%arg0: i32) -> (i32, i32) {
    %c0_i32 = arith.constant 0 : i32
    %c0_i32_0 = arith.constant 0 : i32
    %c0_i32_1 = arith.constant 0 : i32
    return %c0_i32, %c0_i32_0 : i32, i32
  }
  func.func @transform_7(%arg0: i32) -> (i32, i32) {
    %c0_i32 = arith.constant 0 : i32
    %c0_i32_0 = arith.constant 0 : i32
    return %arg0, %c0_i32 : i32, i32
  }
}

</mosaic_0001>

<bundles_post_ra>
// kernel: tpu_custom_call.1
= control target key start
LH: loop header
LB: loop body
LE: loop exit
PB: predicated region body
PF: predicated region fallthrough
CT: control target
= control target key end

     0   :  { %12 = vsyncpa [#allocation3], 0  ;;  %s1404_s0 = inlined_call_operand.vmem [shape: f32[64,8], index: 0, kind: input, shape index: {}]   ;;  %s1405_s1 = inlined_call_operand.vmem [shape: f32[8,128], index: 1, kind: input, shape index: {}]   ;;  %s1406_s2 = inlined_call_operand.vmem [shape: f32[1,128], index: 2, kind: input, shape index: {}]   ;;  %s1407_s3 = inlined_call_operand.hbm [shape: f32[128,128], index: 3, kind: input, shape index: {}]   ;;  %s1408_s4 = inlined_call_operand.vmem [shape: f32[1,128], index: 4, kind: input, shape index: {}]   ;;  %s1409_s5 = inlined_call_operand.hbm [shape: f32[128,128], index: 5, kind: input, shape index: {}]   ;;  %s1410_s6 = inlined_call_operand.vmem [shape: f32[1,128], index: 6, kind: input, shape index: {}]   ;;  %s1411_s7 = inlined_call_operand.hbm [shape: f32[64,128], index: 7, kind: output, shape index: {}]  }
   0x1   :  { %13 = vsyncpa [#allocation6], 0 }
   0x2   :  { %14 = vsyncpa [#allocation4], 0 }
   0x3   :  { %16 = vsyncpa [#allocation4 + $0x1], 0  ;;  %s1214_s24 = smov 0   ;;  %s1216_s25 = smov 0  }
   0x4   :  { %s1218_s26 = smov 0   ;;  %s1220_s27 = smov 0  }
   0x5 LB: > { %s1235_s28 = sadd.s32 4294967295, %s1165_s27   ;;  %s750_s29 = sadd.s32 4294967294, %s1165_s27   ;;  %s1165_s27 = sphi %s1220_s27, %s1431_s27   ;;  %s1161_s26 = sphi %s1218_s26, %s1430_s26   ;;  %s1157_s25 = sphi %s1216_s25, %s1429_s25   ;;  %s1153_s24 = sphi %s1214_s24, %s1428_s24  }
   0x6   : > { %s1239_s30 = sadd.s32 1, %s1165_s27   ;;  %s181_s8 = sadd.s32 1, %s1161_s26 }
   0x7   : > { %s178_s9 = ssub.s32 %s1165_s27, %s1239_s30  ;;  %p191_p0 = scmp.ne.s32.totalorder %s1161_s26, %s1157_s25 }
   0x8   : > { %p179_p1 = scmp.eq.s32.totalorder %s178_s9, 0  ;;  %p192_p2 = scmp.eq.s32.totalorder %s1235_s28, 1 }
   0x9   : > { %p197_p3 = scmp.ne.s32.totalorder %s1157_s25, %s1153_s24  ;;  %p198_p4 = scmp.eq.s32.totalorder %s750_s29, 1 }
   0xa   : > { %s1250_s10 = scalar_select %p179_p1, %s1161_s26, %s181_s8  }
   0xb   : > { %p1252_p5 = por %p192_p2, %p191_p0  ;;  %p1256_p6 = por %p198_p4, %p197_p3 }
   0xc   : > { %1415 = sst [smem:[#allocation11_spill]] %s1250_s10  ;;  %p751_p7 = scmp.ge.s32.totalorder %s1165_s27, 1 }
   0xd   : > { %s1416_s11 = scalar_select %p1252_p5, 1, 0 }
   0xe   : > { %s1417_s12 = scalar_select %p1256_p6, 1, 0 }
   0xf   : > { %p205_p8 = scmp.lt.s32.totalorder %s1165_s27, 3  ;;  %p1412_p9 = scmp.eq.s32.totalorder %s1235_s28, 0 }
  0x10   : > { %s1167_s14 = smov [#allocation2]   ;;  %s1168_s17 = smov [#allocation5]  }
  0x11   : > { %p1263_p10 = pnand %p751_p7, %p205_p8  ;;  %s223_s15 = sshll.u32 %s1167_s14, 4  ;;  %s224_s15 = int_to_ptr.vmem [resolvable:$true] %s223_s15 }
  0x12   : > { %s239_s18 = sshll.u32 %s1168_s17, 4  ;;  %s1039_s21 = scalar_lea.hbm %s1407_s3, 2048  ;;  %s1275_s18 = int_to_ptr.vmem [resolvable:$true] %s239_s18 }
  0x13   : > { %s1418_s13 = scalar_select %p1263_p10, 1, 0 }
  0x14   : > { %p977_p11 = pneg %p1263_p10  ;;  %p1040_p13 = scmp.ne.s32.totalorder %s1407_s3, %s1039_s21 }
  0x15   : > { %p1046_p3 = scmp.lt.u32.totalorder %s1039_s21, %s1407_s3 }
  0x16   : > { %p1271_p12 = pnand %p1412_p9, %p977_p11 }
  0x18   : > { %p1041_p0 = pneg %p1271_p12 }
  0x1a   : > { %p1042_p1 = pnand %p1041_p0, %p1040_p13 }
  0x1c   : > { %p1043_p2 = pneg %p1042_p1 }
  0x1e   : > { %p1048_p4 = pnand %p1046_p3, %p1043_p2 }
  0x20   : > { %1051 = shalt.err (!%p1048_p4)
}
  0x21   : > { %s1052_s9 = scalar_lea.vmem %s224_s15, 2048  ;;  %p1060_p9 = scmp.lt.s32.totalorder %s224_s15, %s224_s15 }
  0x22   : > { %p1053_p7 = scmp.ne.s32.totalorder %s224_s15, %s1052_s9  ;;  %p1061_p6 = scmp.lt.s32.totalorder %s1052_s9, %s1052_s9 }
  0x24   : > { %p1055_p8 = pnand %p1053_p7, %p1041_p0  ;;  %p1062_p5 = por %p1061_p6, %p1060_p9 }
  0x26   : > { %p1056_p11 = pneg %p1055_p8 }
  0x28   : > { %p1063_p10 = pnand %p1062_p5, %p1056_p11 }
  0x2a   : > { %1066 = shalt.err (!%p1063_p10)
}
  0x2b   : > { %s1169_s14 = smov 128   ;;  %s1170_s17 = smov 8  }
  0x2c   : > { %980 = dma.hbm_to_vmem [thread:$0]  (!%p1271_p12), %s1407_s3, 2048, %s224_s15, [#allocation3], %s1169_s14, %s1169_s14, %s1170_s17  }
  0x2d   : > { %s1067_s23 = scalar_lea.hbm %s1409_s5, 2048 }
  0x2e   : > { %p1068_p13 = scmp.ne.s32.totalorder %s1409_s5, %s1067_s23  ;;  %p1074_p9 = scmp.lt.u32.totalorder %s1067_s23, %s1409_s5 }
  0x30   : > { %p1070_p5 = pnand %p1068_p13, %p1041_p0 }
  0x32   : > { %p1071_p6 = pneg %p1070_p5 }
  0x34   : > { %p1076_p10 = pnand %p1074_p9, %p1071_p6 }
  0x36   : > { %1079 = shalt.err (!%p1076_p10)
}
  0x37   : > { %s1080_s15 = scalar_lea.vmem %s1275_s18, 2048  ;;  %p1088_p4 = scmp.lt.s32.totalorder %s1275_s18, %s1275_s18 }
  0x38   : > { %p1081_p1 = scmp.ne.s32.totalorder %s1275_s18, %s1080_s15  ;;  %p1089_p7 = scmp.lt.s32.totalorder %s1080_s15, %s1080_s15 }
  0x3a   : > { %p1083_p2 = pnand %p1081_p1, %p1041_p0  ;;  %p1090_p8 = por %p1089_p7, %p1088_p4 }
  0x3c   : > { %p1084_p3 = pneg %p1083_p2 }
  0x3e   : > { %p1091_p11 = pnand %p1090_p8, %p1084_p3 }
  0x40   : > { %1094 = shalt.err (!%p1091_p11)
}
  0x41   : > { %983 = dma.hbm_to_vmem [thread:$0]  (!%p1271_p12), %s1409_s5, 2048, %s1275_s18, [#allocation6], %s1169_s14, %s1169_s14, %s1170_s17  }
  0x42   : > { %p1420_p13 = scmp.ne.s32.totalorder %s1418_s13, 0 }
  0x43   : > { %p1421_p5 = scmp.eq.s32.totalorder (!%p1420_p13), %s1235_s28, 0 }
  0x44   : > { %267 = sbr.rel (%p1420_p13) target bundleno = 769 (0x301), region = 48 }
  0x4b   : > { %1140 = dma.done.wait (%p1421_p5), [#allocation3], 2048   ;;  %p1422_p0 = pmov %p1421_p5 }
  0x4d   : > { %1142 = vsyncadd (%p1422_p0), [#allocation3], 4294965248  ;;  %p1423_p6 = pmov %p1422_p0 }
  0x4e   : > { %p1424_p9 = pmov %p1422_p0 }
  0x4f   : > { %1144 = dma.done.wait (%p1423_p6), [#allocation6], 2048  }
  0x50   : > { %1146 = vsyncadd (%p1424_p9), [#allocation6], 4294965248  ;;  %s759_s16 = sshll.u32 %s1235_s28, 2  ;;  %vm322_vm0 = vcmask 64512   ;;  %v314_v0 = vld [vmem:[%s1405_s1] sm:$0xff]  ;;  %v425_v5 = vld [vmem:[#allocation2 + $0x8] sm:$0xff] }
  0x51   : > { %p304_p10 = scmp.lt.s32.totalorder %s759_s16, 7  ;;  %819 = vmatprep.subr.mxu0 %v314_v0  ;;  %v424_v4 = vld [vmem:[#allocation2] sm:$0xff]  ;;  %v426_v6 = vld [vmem:[#allocation2 + $0x10] sm:$0xff]  ;;  %v427_v7 = vld [vmem:[#allocation2 + $0x18] sm:$0xff]  ;;  %s300_s10 = sand.u32 1, %s1157_s25  }
  0x52   : > { %820 = vmatpush3.msra.mxu0 %v314_v0  ;;  %v903_v8 = vpack.c.bf16 %v425_v5, %v424_v4  ;;  %v907_v9 = vpack.c.bf16 %v427_v7, %v426_v6  ;;  %v428_v11 = vld [vmem:[#allocation2 + $0x20] sm:$0xff]  ;;  %v429_v12 = vld [vmem:[#allocation2 + $0x28] sm:$0xff]  ;;  %v430_v14 = vld [vmem:[#allocation2 + $0x30] sm:$0xff]  ;;  %s758_s19 = sshll.u32 %s300_s10, 5  ;;  %p1425_p1 = scmp.ne.s32.totalorder %s1416_s11, 0 }
  0x53   : > { %s1433_s16 = smov (!%p304_p10, %s759_s16), 7  ;;  %v911_v13 = vpack.c.bf16 %v429_v12, %v428_v11  ;;  %v431_v15 = vld [vmem:[#allocation2 + $0x38] sm:$0xff]  ;;  %v432_v17 = vld [vmem:[#allocation2 + $0x40] sm:$0xff]  ;;  %v433_v18 = vld [vmem:[#allocation2 + $0x48] sm:$0xff]  ;;  %s1171_s22 = smov [#allocation7]  }
  0x54   : > { %s760_s18 = sshll.u32 %s1433_s16, 3  ;;  %904 = vmatprep.subr.bf16.mxu1 %v903_v8  ;;  %v915_v16 = vpack.c.bf16 %v431_v15, %v430_v14  ;;  %v919_v19 = vpack.c.bf16 %v433_v18, %v432_v17  ;;  %v434_v20 = vld [vmem:[#allocation2 + $0x50] sm:$0xff]  ;;  %v435_v21 = vld [vmem:[#allocation2 + $0x58] sm:$0xff]  ;;  %v436_v23 = vld [vmem:[#allocation2 + $0x60] sm:$0xff]  ;;  %s773_s16 = sshll.u32 %s1235_s28, 9 }
  0x55   : > { %s307_s17 = scalar_lea.vmem %s1404_s0, %s760_s18  ;;  %906 = vmatpush3.bf16.msra.mxu1 %v903_v8  ;;  %v923_v22 = vpack.c.bf16 %v435_v21, %v434_v20  ;;  %v437_v24 = vld [vmem:[#allocation2 + $0x68] sm:$0xff]  ;;  %v438_v26 = vld [vmem:[#allocation2 + $0x70] sm:$0xff]  ;;  %v439_v27 = vld [vmem:[#allocation2 + $0x78] sm:$0xff]  ;;  %s302_s18 = scalar_lea.vmem [#allocation7], %s758_s19 }
  0x56   : > { %v310_v1 = vld [vmem:[%s307_s17] sm:$0xff]  ;;  %v311_v2 = vld [vmem:[%s307_s17 + $0x8] sm:$0xff]  ;;  %v312_v3 = vld [vmem:[%s307_s17 + $0x10] sm:$0xff]  ;;  %908 = vmatprep.subr.bf16.mxu1 %v907_v9  ;;  %v927_v25 = vpack.c.bf16 %v437_v24, %v436_v23  ;;  %v931_v28 = vpack.c.bf16 %v439_v27, %v438_v26  ;;  %s666_s13 = sshll.u32 %s302_s18, 4  ;;  %s1359_s20 = scalar_lea.hbm %s1411_s7, %s773_s16  ;;  %s1361_s13 = int_to_ptr.vmem [resolvable:$true] %s666_s13 }
  0x57   : > { %821 = vmatprep.mubr.msk.f32.mxu0 %vm322_vm0, %v310_v1  ;;  %v313_v10 = vld [vmem:[%s307_s17 + $0x18] sm:$0xff]  ;;  %v536_v29 = vld [vmem:[#allocation5] sm:$0xff]  ;;  %v537_v30 = vld [vmem:[#allocation5 + $0x8] sm:$0xff]  ;;  %s1363_s28 = scalar_lea.sflag [#allocation4], %s300_s10  ;;  %s1095_s21 = scalar_lea.vmem %s1361_s13, 512 }
  0x58   : > { %822 = vmatmul.mubr.msk.f32.vlgmr.msra.gmra.mrb[0].mxu0 %vm322_vm0, %v311_v2  ;;  %v538_v31 = vld [vmem:[#allocation5 + $0x10] sm:$0xff]  ;;  %v935_v32 = vpack.c.bf16 %v537_v30, %v536_v29  ;;  %v539_v33 = vld [vmem:[#allocation5 + $0x18] sm:$0xff]  ;;  %v540_v35 = vld [vmem:[#allocation5 + $0x20] sm:$0xff]  ;;  %p1096_p12 = scmp.ne.s32.totalorder %s1361_s13, %s1095_s21  ;;  %s1099_s23 = sshll.u32 %s1171_s22, 4  ;;  %s1100_s23 = int_to_ptr.vmem [resolvable:$false] %s1099_s23 }
  0x59   : > { %824 = vmatprep.mubr.msk.f32.mxu0 %vm322_vm0, %v312_v3  ;;  %910 = vmatpush3.bf16.msra.mxu1 %v907_v9  ;;  %v939_v34 = vpack.c.bf16 %v539_v33, %v538_v31  ;;  %v541_v36 = vld [vmem:[#allocation5 + $0x28] sm:$0xff]  ;;  %v542_v38 = vld [vmem:[#allocation5 + $0x30] sm:$0xff]  ;;  %v543_v39 = vld [vmem:[#allocation5 + $0x38] sm:$0xff]  ;;  %s1101_s29 = scalar_lea.vmem %s1100_s23, 1024  ;;  %p1102_p4 = scmp.lt.s32.totalorder %s1361_s13, %s1100_s23 }
  0x5a   : > { %912 = vmatprep.subr.bf16.mxu1 %v911_v13  ;;  %936 = vmatprep.subr.bf16.mxu0 %v935_v32  ;;  %v943_v37 = vpack.c.bf16 %v541_v36, %v540_v35  ;;  %v947_v40 = vpack.c.bf16 %v543_v39, %v542_v38  ;;  %v544_v41 = vld [vmem:[#allocation5 + $0x40] sm:$0xff]  ;;  %v545_v42 = vld [vmem:[#allocation5 + $0x48] sm:$0xff]  ;;  %v546_v44 = vld [vmem:[#allocation5 + $0x50] sm:$0xff]  ;;  %p1097_p2 = pnand %p1096_p12, %p1425_p1  ;;  %p1103_p7 = scmp.lt.s32.totalorder %s1101_s29, %s1095_s21 }
  0x5b   : > { %938 = vmatpush3.bf16.msra.mxu0 %v935_v32  ;;  %v951_v43 = vpack.c.bf16 %v545_v42, %v544_v41  ;;  %v547_v45 = vld [vmem:[#allocation5 + $0x58] sm:$0xff]  ;;  %v548_v47 = vld [vmem:[#allocation5 + $0x60] sm:$0xff]  ;;  %v549_v48 = vld [vmem:[#allocation5 + $0x68] sm:$0xff] }
  0x5c   : > { %825 = vmatmul.mubr.msk.f32.gmra.mrb[2].mxu0 %vm322_vm0, %v313_v10  ;;  %940 = vmatprep.subr.bf16.mxu0 %v939_v34  ;;  %v955_v46 = vpack.c.bf16 %v547_v45, %v546_v44  ;;  %v959_v49 = vpack.c.bf16 %v549_v48, %v548_v47  ;;  %v761_v50 = vld [vmem:[%s1406_s2] ss:$0 sm:$0xff]  ;;  %v550_v63 = vld [vmem:[#allocation5 + $0x70] sm:$0xff]  ;;  %v551_v0 = vld [vmem:[#allocation5 + $0x78] sm:$0xff]  ;;  %p1098_p3 = pneg %p1097_p2  ;;  %p1104_p8 = por %p1103_p7, %p1102_p4 }
  0x5d   : > { %914 = vmatpush3.bf16.msra.mxu1 %v911_v13  ;;  %v963_v1 = vpack.c.bf16 %v551_v0, %v550_v63  ;;  %v766_v2 = vld [vmem:[%s1408_s4] ss:$0 sm:$0xff] }
  0x5e   : > { %916 = vmatprep.subr.bf16.mxu1 %v915_v16  ;;  %v767_v15 = vld [vmem:[%s1410_s6] ss:$0 sm:$0xff]  ;;  %p1105_p11 = pnand %p1104_p8, %p1098_p3 }
  0x5f   : > { %942 = vmatpush3.bf16.msra.mxu0 %v939_v34 }
  0x60   : > { %944 = vmatprep.subr.bf16.mxu0 %v943_v37 }
  0x61   : > { %918 = vmatpush3.bf16.msra.mxu1 %v915_v16 }
  0x62   : > { %920 = vmatprep.subr.bf16.mxu1 %v919_v19 }
  0x63   : > { %946 = vmatpush3.bf16.msra.mxu0 %v943_v37 }
  0x64   : > { %948 = vmatprep.subr.bf16.mxu0 %v947_v40 }
  0x65   : > { %922 = vmatpush3.bf16.msra.mxu1 %v919_v19 }
  0x66   : > { %924 = vmatprep.subr.bf16.mxu1 %v923_v22 }
  0x67   : > { %950 = vmatpush3.bf16.msra.mxu0 %v947_v40 }
  0x68   : > { %952 = vmatprep.subr.bf16.mxu0 %v951_v43 }
  0x69   : > { %926 = vmatpush3.bf16.msra.mxu1 %v923_v22 }
  0x6a   : > { %928 = vmatprep.subr.bf16.mxu1 %v927_v25 }
  0x6b   : > { %954 = vmatpush3.bf16.msra.mxu0 %v951_v43 }
  0x6c   : > { %956 = vmatprep.subr.bf16.mxu0 %v955_v46 }
  0x6d   : > { %930 = vmatpush3.bf16.msra.mxu1 %v927_v25 }
  0x6e   : > { %932 = vmatprep.subr.bf16.mxu1 %v931_v28 }
  0x6f   : > { %958 = vmatpush3.bf16.msra.mxu0 %v955_v46 }
  0x70   : > { %960 = vmatprep.subr.bf16.mxu0 %v959_v49 }
  0x71   : > { %934 = vmatpush3.bf16.msra.mxu1 %v931_v28 }
  0x73   : > { %962 = vmatpush3.bf16.msra.mxu0 %v959_v49 }
  0x74   : > { %964 = vmatprep.subr.bf16.mxu0 %v963_v1 }
  0x77   : > { %966 = vmatpush3.bf16.msra.mxu0 %v963_v1 }
 0x12b   : > { %v823_v51 = vpop.f32.mrb[0].mxu0 }
 0x12c   : > { %v407_v52 = vadd.f32 %v823_v51, %v761_v50  ;;  %v401_v53 = vpop.f32.mrb[1].mxu0 }
 0x12d   : > { %v402_v54 = vadd.f32 %v761_v50, %v401_v53 }
 0x12e   : > { %v421_v57 = vmax.f32 %v407_v52, 0.0 }
 0x12f   : > { %v826_v55 = vpop.f32.mrb[2].mxu0  ;;  %v420_v56 = vmax.f32 %v402_v54, 0.0 }
 0x130   : > { %v417_v58 = vadd.f32 %v826_v55, %v761_v50  ;;  %v411_v59 = vpop.f32.mrb[3].mxu0 }
 0x131   : > { %v412_v60 = vadd.f32 %v761_v50, %v411_v59  ;;  %859 = vmatprep.mubr.f32.mxu1 %v420_v56 }
 0x132   : > { %860 = vmatmul.mubr.f32.vlgmr.msra.gmra.mrb[0].mxu1 %v421_v57  ;;  %v423_v62 = vmax.f32 %v417_v58, 0.0 }
 0x133   : > { %v422_v61 = vmax.f32 %v412_v60, 0.0 }
 0x135   : > { %862 = vmatprep.mubr.f32.mxu1 %v422_v61 }
 0x136   : > { %863 = vmatmul.mubr.f32.gmra.mrb[2].mxu1 %v423_v62 }
 0x205   : > { %v861_v3 = vpop.f32.mrb[0].mxu1 }
 0x206   : > { %v519_v4 = vadd.f32 %v861_v3, %v766_v2  ;;  %v513_v5 = vpop.f32.mrb[1].mxu1 }
 0x207   : > { %v514_v6 = vadd.f32 %v766_v2, %v513_v5 }
 0x208   : > { %v533_v9 = vmax.f32 %v519_v4, 0.0 }
 0x209   : > { %v532_v7 = vmax.f32 %v514_v6, 0.0  ;;  %v864_v8 = vpop.f32.mrb[2].mxu1 }
 0x20a   : > { %v529_v10 = vadd.f32 %v864_v8, %v766_v2  ;;  %v523_v11 = vpop.f32.mrb[3].mxu1 }
 0x20b   : > { %v524_v12 = vadd.f32 %v766_v2, %v523_v11  ;;  %897 = vmatprep.mubr.f32.mxu0 %v532_v7 }
 0x20c   : > { %898 = vmatmul.mubr.f32.vlgmr.msra.gmra.mrb[4].mxu0 %v533_v9  ;;  %v535_v14 = vmax.f32 %v529_v10, 0.0 }
 0x20d   : > { %v534_v13 = vmax.f32 %v524_v12, 0.0 }
 0x20f   : > { %900 = vmatprep.mubr.f32.mxu0 %v534_v13 }
 0x210   : > { %901 = vmatmul.mubr.f32.gmra.mrb[6].mxu0 %v535_v14 }
 0x2df   : > { %v899_v16 = vpop.f32.mrb[4].mxu0 }
 0x2e0   : > { %v631_v17 = vadd.f32 %v899_v16, %v767_v15  ;;  %v625_v18 = vpop.f32.mrb[5].mxu0 }
 0x2e1   : > { %v626_v19 = vadd.f32 %v767_v15, %v625_v18 }
 0x2e2   : > { %1031 = vtanh.f32 %v631_v17 }
 0x2e3   : > { %1033 = vtanh.f32 %v626_v19  ;;  %v902_v20 = vpop.f32.mrb[6].mxu0 }
 0x2e4   : > { %v641_v21 = vadd.f32 %v902_v20, %v767_v15  ;;  %v635_v22 = vpop.f32.mrb[7].mxu0 }
 0x2e5   : > { %v636_v23 = vadd.f32 %v767_v15, %v635_v22 }
 0x2e6   : > { %1035 = vtanh.f32 %v641_v21 }
 0x2e7   : > { %1037 = vtanh.f32 %v636_v23 }
 0x2ec   : > { %v1032_v24 = vpop.eup %1031 }
 0x2ed   : > { %v1034_v25 = vpop.eup %1033  ;;  %649 = vst [vmem:[%s302_s18 + $0x8] sm:$0xff] %v1032_v24 }
 0x2ee   : > { %648 = vst [vmem:[%s302_s18] sm:$0xff] %v1034_v25 }
 0x2f0   : > { %v1036_v26 = vpop.eup %1035 }
 0x2f1   : > { %v1038_v27 = vpop.eup %1037  ;;  %651 = vst [vmem:[%s302_s18 + $0x18] sm:$0xff] %v1036_v26 }
 0x2f2   : > { %650 = vst [vmem:[%s302_s18 + $0x10] sm:$0xff] %v1038_v27 }
 0x2f3   : > { %1108 = shalt.err (!%p1105_p11)
}
 0x2f4   : > { %s1109_s8 = scalar_lea.hbm %s1359_s20, 512  ;;  %s1113_s10 = scalar_lea.hbm %s1411_s7, 1024 }
 0x2f5   : > { %p1110_p13 = scmp.ne.s32.totalorder %s1359_s20, %s1109_s8  ;;  %p1114_p6 = scmp.lt.u32.totalorder %s1359_s20, %s1411_s7 }
 0x2f6   : > { %p1115_p9 = scmp.lt.u32.totalorder %s1113_s10, %s1109_s8  ;;  %p1117_p12 = scmp.lt.u32.totalorder %s1109_s8, %s1359_s20 }
 0x2f7   : > { %p1111_p5 = pnand %p1110_p13, %p1425_p1 }
 0x2f8   : > { %p1116_p10 = por %p1115_p9, %p1114_p6 }
 0x2f9   : > { %p1112_p0 = pneg %p1111_p5 }
 0x2fa   : > { %p1118_p2 = por %p1117_p12, %p1116_p10 }
 0x2fc   : > { %p1119_p3 = pnand %p1118_p2, %p1112_p0 }
 0x2fe   : > { %1122 = shalt.err (!%p1119_p3)
}
 0x2ff   : > { %s1172_s18 = smov 128   ;;  %s1173_s14 = smov 8  }
 0x300   : > { %975 = dma.vmem_to_hbm [thread:$0]  (%p1425_p1), %s1361_s13, 512, %s1359_s20, %s1363_s28, %s1172_s18, %s1172_s18, %s1173_s14  }
 0x301 PF: > { %p992_p4 = scmp.ge.s32.totalorder %s1165_s27, 2  ;;  %s681_s17 = sand.u32 1, %s1153_s24  }
 0x302   : > { %p1426_p7 = scmp.ne.s32.totalorder %s1417_s12, 0  ;;  %s682_s21 = scalar_lea.sflag [#allocation4], %s681_s17 }
 0x304   : > { %p985_p8 = pnand %p992_p4, %p1426_p7 }
 0x306   : > { %1148 = dma.done.wait (!%p985_p8), %s682_s21, 512  }
 0x307   : > { %1150 = vsyncadd (!%p985_p8), %s682_s21, 4294966784  ;;  %s1427_s22 = sld [smem:[#allocation11_spill]]  ;;  %p19_p11 = scmp.ge.s32.totalorder %s1239_s30, 4  }
 0x308   : > { %s1428_s24 = smov %s1157_s25  ;;  %s1429_s25 = smov %s1161_s26 }
 0x309   : > { %s1431_s27 = smov %s1239_s30  ;;  %21 = sbr.rel (!%p19_p11) target bundleno = 5 (0x5), region = 92 }
 0x30d   : > { %s1430_s26 = smov %s1427_s22 }
 0x310   :  { %687 = vsyncpa [#allocation3], 1 }
 0x311   :  { %689 = vsyncpa [#allocation3 + $0x1], 1 }
 0x312   :  { %690 = vsyncpa [#allocation6], 1 }
 0x313   :  { %691 = vsyncpa [#allocation4], 1 }
 0x314   :  { %693 = vsyncpa [#allocation4 + $0x1], 1 }

</bundles_post_ra>
